<compile_context>
chip_gen: v7x
topology: tpu7x:2x2x1
jax: 0.10.0
libtpu: 0.0.40
codegen_flags: <defaults>
</compile_context>

<pallas_src>
import numpy as np
import jax
import jax.numpy as jnp
from jax.experimental import pallas as pl
from jax.experimental.pallas import tpu as pltpu

# ---- problem sizes (small, consistent with the module) ----
N = 16          # nodes in g1
M = 24          # nodes in g2
F = 32          # n_features
NUM_PAIRS = 2
NUM_CANDS = 2
B = NUM_PAIRS * NUM_CANDS

# ---- hyperparameters from __init__ ----
ALPHA, BETA, GAMMA, TAU, THETA = 1.0, 0.5, 0.25, 0.1, 0.5
GIN_EPS = 0.0        # GINConv default eps (train_eps=False)
EPS = 1e-12
TRAINING = True      # loss_4 is only computed in training mode

# ---- packed-layout constants ----
NM = N * M                        # 384
PACK_USED = NM + 2 * N + 2 * M    # 464
PACK = 512                        # padded per-candidate slab width
PAD_LANES = PACK - PACK_USED      # 48
HALF = PACK // 2                  # 256: each candidate becomes 2 dense rows of 256 lanes
PROWS = 2 * B                     # 8 prediction rows (and 8 matching weight rows)

PC = N + M                        # 40 nodes per candidate (multiple of 8, no padding)
TOT = B * PC                      # 160 node columns (lane axis of the GIN slabs)
GROWS = TOT + F + 8               # 200 rows: [block-diag A^T | X^T | aux(z_pred, sign)]

K_YT = float(N * M + 1)           # strictly > any possible sum(y_true) -> log() argument stays positive
# per-candidate constant s.t.  sum(both P rows) - YCONST == sum(y_pred) - sum(y_true)
# (zp + (1-zp) lanes sum to N+M, the 47 plain pad lanes to 47, the special pad lane is K_YT - yt_sum)
YCONST = float(N + M + (PAD_LANES - 1)) + K_YT

# TODO(synk): pairs with differing (N, M) per pair would need per-pair padded node slots; here all
#             pairs share one shape so a single fused kernel call is used.


def loss_kernel(pw_ref, g_ref, out_ref):
    # ---- losses 1 & 2 (+ sums needed for loss 3) from the dense (16,256) slab ----
    p2 = pw_ref[0:PROWS, :]                                  # (8,256) predictions
    w2 = pw_ref[PROWS:2 * PROWS, :]                          # (8,256) fused -alpha/-beta weights
    logp = jnp.log(p2 + EPS)                                 # single EUP pass, dense vregs
    row_l12 = jnp.sum(w2 * logp, axis=1, keepdims=True)      # (8,1): per-row alpha*l1 + beta*l2 parts
    row_ps = jnp.sum(p2, axis=1, keepdims=True)              # (8,1): per-row raw sums (for loss_3)

    # ---- loss 4: 3-layer GIN with the 160 node columns in lanes ----
    at = g_ref[0:TOT, :]                                     # (160,160) block-diagonal A^T
    x = g_ref[TOT:TOT + F, :]                                # (32,160)  X^T
    aux = g_ref[TOT + F:GROWS, :]                            # (8,160)   [z_pred | 0 | 0 | 0 | sign rows]
    zn = aux[0:1, :]                                         # (1,160) node-aligned z_pred
    sgn = aux[4:4 + B, :]                                    # (B,160) +1 g1 cols / -1 g2 cols per cand
    mask = jnp.broadcast_to((zn > THETA).astype(jnp.float32), (F, TOT))   # hoisted broadcast
    x = mask * x
    for _ in range(3):                                       # 3 lane-dense matmuls (was 24 tiny ones)
        x = jnp.maximum(
            (1.0 + GIN_EPS) * x
            + jnp.dot(x, at, preferred_element_type=jnp.float32),
            0.0,
        )
        x = mask * x
    node_sum = jnp.sum(x, axis=0, keepdims=True)             # (1,160) sublane reduce over F
    s = jnp.sum(node_sum * sgn, axis=1, keepdims=True)       # (B,1)  == sum(u1 - u2) per candidate

    # ---- per-candidate combine, min over candidates per pair, mean over pairs ----
    inv_half = 2.0 / (N + M)
    total = jnp.zeros((1, 1), jnp.float32)
    for p in range(NUM_PAIRS):
        best = None
        for c in range(NUM_CANDS):
            b = p * NUM_CANDS + c
            l12 = row_l12[2 * b:2 * b + 1, :] + row_l12[2 * b + 1:2 * b + 2, :]     # alpha*l1 + beta*l2
            full = row_ps[2 * b:2 * b + 1, :] + row_ps[2 * b + 1:2 * b + 2, :]
            ydiff = (full - YCONST) * inv_half                                       # sum(yp)-sum(yt) scaled
            cand = l12 + GAMMA * ydiff * ydiff
            if TRAINING:
                sb = s[b:b + 1, :] * (1.0 / F)
                cand = cand + TAU * sb * sb
            best = cand if best is None else jnp.minimum(best, cand)
        total = total + best
    out_ref[...] = total * (1.0 / NUM_PAIRS)


@jax.jit
def our_loss_forward(y_true, y_pred, zt1, zp1, zt2, zp2, x1, a1, x2, a2):
    f32 = jnp.float32

    # ---------- P/W slabs, sublane-dense (2 rows of 256 lanes per candidate) ----------
    yp = y_pred.reshape(B, NM)
    yt = y_true.reshape(B, NM)
    yt_sum = jnp.sum(yt, axis=1, keepdims=True)                               # (B,1)
    zp1f = zp1.reshape(B, N)
    zp2f = zp2.reshape(B, M)
    zt1f = zt1.reshape(B, N)
    zt2f = zt2.reshape(B, M)
    # pad lane 0 carries K_YT - sum(y_true) so loss_3 needs no extra input; remaining pads are 1.0.
    p_pad = jnp.concatenate([K_YT - yt_sum, jnp.ones((B, PAD_LANES - 1), f32)], axis=1)
    P = jnp.concatenate([yp, zp1f, 1.0 - zp1f, zp2f, 1.0 - zp2f, p_pad], axis=1)          # (B,512)
    cz1 = BETA * 0.5 / N
    cz2 = BETA * 0.5 / M
    W = jnp.concatenate(
        [-ALPHA * yt / (yt_sum + EPS),
         -cz1 * zt1f, -cz1 * (1.0 - zt1f),
         -cz2 * zt2f, -cz2 * (1.0 - zt2f),
         jnp.zeros((B, PAD_LANES), f32)], axis=1)                                         # (B,512)
    PW = jnp.concatenate([P.reshape(PROWS, HALF), W.reshape(PROWS, HALF)], axis=0)        # (16,256)

    # ---------- GIN slab: [block-diag A^T | X^T | aux], node columns in lanes ----------
    a1t = jnp.swapaxes(a1, 1, 2)
    a2t = jnp.swapaxes(a2, 1, 2)
    atb = jnp.concatenate(
        [jnp.concatenate([a1t, jnp.zeros((B, N, M), f32)], axis=2),
         jnp.concatenate([jnp.zeros((B, M, N), f32), a2t], axis=2)], axis=1)              # (B,40,40)
    # single fused eye-broadcast expansion to the 160x160 block diagonal (no .at[].set / DUS loop)
    at_full = (atb[:, :, None, :] * jnp.eye(B, dtype=f32)[:, None, :, None]).reshape(TOT, TOT)

    xs = jnp.concatenate([x1, x2], axis=1)                                                # (B,40,F)
    XT = jnp.transpose(xs, (2, 0, 1)).reshape(F, TOT)                                     # (32,160)
    ZN = jnp.concatenate([zp1, zp2], axis=1).reshape(1, TOT)                              # (1,160)

    sgn_np = np.zeros((B, TOT), np.float32)                                               # structural const
    for b in range(B):
        sgn_np[b, b * PC:b * PC + N] = 1.0
        sgn_np[b, b * PC + N:(b + 1) * PC] = -1.0
    AUX = jnp.concatenate([ZN, jnp.zeros((3, TOT), f32), jnp.asarray(sgn_np)], axis=0)    # (8,160)
    G = jnp.concatenate([at_full, XT, AUX], axis=0)                                       # (200,160)

    # ---------- single fused kernel invocation (2 inputs, 1 scalar output) ----------
    # NOTE(v7x): with many pairs, switch to grid=(NUM_PAIRS,) + dimension_semantics=("parallel",) and
    # per-pair blocks to shard over both TensorCores; at this toy size one invocation is fastest.
    out = pl.pallas_call(
        loss_kernel,
        out_shape=jax.ShapeDtypeStruct((1, 1), jnp.float32),
        grid=(1,),
        in_specs=[
            pl.BlockSpec((2 * PROWS, HALF), lambda i: (0, 0)),   # PW   (16,256)
            pl.BlockSpec((GROWS, TOT), lambda i: (0, 0)),        # G    (200,160)
        ],
        out_specs=pl.BlockSpec((1, 1), lambda i: (0, 0)),
        compiler_params=pltpu.CompilerParams(dimension_semantics=("arbitrary",)),
    )(PW, G)
    return out[0, 0]


# ---------------- pure-JAX reference (mirrors the PyTorch forward) ----------------
def ref_forward(y_true, y_pred, zt1, zp1, zt2, zp2, x1, a1, x2, a2):
    def gin_emb(x, a, mask):
        x = mask * x
        for _ in range(3):
            x = jnp.maximum((1.0 + GIN_EPS) * x + a @ x, 0.0)
            x = mask * x
        return jnp.sum(x, axis=0)

    total = 0.0
    for p in range(NUM_PAIRS):
        cand = []
        for c in range(NUM_CANDS):
            b = p * NUM_CANDS + c
            yt, yp = y_true[b], y_pred[b]
            l1 = jnp.sum(-yt * jnp.log(yp + EPS)) / (jnp.sum(yt) + EPS)
            l2 = 0.5 * (
                (jnp.sum(-zt1[b] * jnp.log(zp1[b] + EPS))
                 + jnp.sum(-(1 - zt1[b]) * jnp.log(1 - zp1[b] + EPS))) / N
                + (jnp.sum(-zt2[b] * jnp.log(zp2[b] + EPS))
                   + jnp.sum(-(1 - zt2[b]) * jnp.log(1 - zp2[b] + EPS))) / M)
            l3 = ((jnp.sum(yp) - jnp.sum(yt)) / ((N + M) / 2.0)) ** 2
            m1 = (zp1[b] > THETA).astype(jnp.float32)
            m2 = (zp2[b] > THETA).astype(jnp.float32)
            u1 = gin_emb(x1[b], a1[b], m1)
            u2 = gin_emb(x2[b], a2[b], m2)
            l4 = (jnp.sum(u1 - u2) / F) ** 2
            cand.append(ALPHA * l1 + BETA * l2 + GAMMA * l3 + TAU * l4)
        total = total + jnp.min(jnp.stack(cand))
    return total / NUM_PAIRS


def _ring_adj(n, chord):
    a = np.zeros((n, n), np.float32)
    for i in range(n):
        a[i, (i + 1) % n] = 1.0
        a[(i + 1) % n, i] = 1.0
        a[i, (i + chord) % n] = 1.0
        a[(i + chord) % n, i] = 1.0
    return a


if __name__ == "__main__":
    key = jax.random.PRNGKey(0)
    ks = jax.random.split(key, 12)

    # Unused linear layers from __init__ (fc1/fc2/fc3) — deterministic init, never used in forward().
    _fc_w = [0.1 * jax.random.normal(ks[6 + i], (F, F), jnp.float32) for i in range(3)]
    _fc_b = [jnp.zeros((F,), jnp.float32) for _ in range(3)]

    # ---- deterministic ground truth per pair ----
    y_true_np = np.zeros((B, N, M), np.float32)
    zt1_np = np.zeros((B, N, 1), np.float32)
    zt2_np = np.zeros((B, M, 1), np.float32)
    for p in range(NUM_PAIRS):
        y_true_dict = {i: (3 * i + p) % M for i in range(0, N, 2)}
        for c in range(NUM_CANDS):
            b = p * NUM_CANDS + c
            for nid1, nid2 in y_true_dict.items():
                y_true_np[b, nid1, nid2] = 1.0
                zt1_np[b, nid1, 0] = 1.0
                zt2_np[b, nid2, 0] = 1.0

    # ---- deterministic graph structure / features per pair (shared across candidates) ----
    a1_np = np.stack([_ring_adj(N, 5 + p) for p in range(NUM_PAIRS)])   # (P, N, N)
    a2_np = np.stack([_ring_adj(M, 7 + p) for p in range(NUM_PAIRS)])   # (P, M, M)
    x1_p = jax.random.normal(ks[0], (NUM_PAIRS, N, F), jnp.float32)
    x2_p = jax.random.normal(ks[1], (NUM_PAIRS, M, F), jnp.float32)

    y_true = jnp.asarray(y_true_np)
    zt1 = jnp.asarray(zt1_np)
    zt2 = jnp.asarray(zt2_np)
    a1 = jnp.repeat(jnp.asarray(a1_np), NUM_CANDS, axis=0)              # (B, N, N)
    a2 = jnp.repeat(jnp.asarray(a2_np), NUM_CANDS, axis=0)              # (B, M, M)
    x1 = jnp.repeat(x1_p, NUM_CANDS, axis=0)                            # (B, N, F)
    x2 = jnp.repeat(x2_p, NUM_CANDS, axis=0)                            # (B, M, F)

    # ---- deterministic model predictions (one set per candidate) ----
    y_pred = jax.nn.sigmoid(jax.random.normal(ks[2], (B, N, M), jnp.float32))
    zp1 = jax.nn.sigmoid(jax.random.normal(ks[3], (B, N, 1), jnp.float32))
    zp2 = jax.nn.sigmoid(jax.random.normal(ks[4], (B, M, 1), jnp.float32))

    loss = our_loss_forward(y_true, y_pred, zt1, zp1, zt2, zp2, x1, a1, x2, a2)
    loss = jax.block_until_ready(loss)

    ref = jax.block_until_ready(
        ref_forward(y_true, y_pred, zt1, zp1, zt2, zp2, x1, a1, x2, a2))
    assert np.allclose(np.asarray(loss), np.asarray(ref), rtol=1e-4, atol=1e-5), (loss, ref)

    print("KERNEL_OK")
</pallas_src>

<mosaic_0001>
module attributes {stable_mosaic.version = 11 : i64} {
  func.func @loss_kernel(%arg0: i32, %arg1: memref<16x256xf32, #tpu.memory_space<vmem>>, %arg2: memref<200x160xf32, #tpu.memory_space<vmem>>, %arg3: memref<1x1xf32, #tpu.memory_space<vmem>>) attributes {dimension_semantics = [#tpu.dimension_semantics<arbitrary>], iteration_bounds = array<i64: 1>, scalar_prefetch = 0 : i64, scratch_operands = 0 : i64, tpu.core_type = #tpu.core_type<tc>, window_params = [{pipeline_mode = #tpu.pipeline_mode<synchronous>, transform_indices = @transform_0, window_bounds = array<i64: 16, 256>}, {pipeline_mode = #tpu.pipeline_mode<synchronous>, transform_indices = @transform_1, window_bounds = array<i64: 200, 160>}, {pipeline_mode = #tpu.pipeline_mode<synchronous>, transform_indices = @transform_2, window_bounds = array<i64: 1, 1>}]} {
    %c0 = arith.constant 0 : index
    %c0_0 = arith.constant 0 : index
    %0 = vector.load %arg1[%c0, %c0_0] : memref<16x256xf32, #tpu.memory_space<vmem>>, vector<8x256xf32>
    %c8 = arith.constant 8 : index
    %c0_1 = arith.constant 0 : index
    %1 = vector.load %arg1[%c8, %c0_1] : memref<16x256xf32, #tpu.memory_space<vmem>>, vector<8x256xf32>
    %cst = arith.constant 9.99999996E-13 : f32
    %2 = vector.broadcast %cst : f32 to vector<8x256xf32>
    %3 = arith.addf %0, %2 : vector<8x256xf32>
    %4 = math.log %3 : vector<8x256xf32>
    %5 = arith.mulf %1, %4 : vector<8x256xf32>
    %cst_2 = arith.constant dense<0.000000e+00> : vector<8xf32>
    %6 = vector.multi_reduction <add>, %5, %cst_2 [1] : vector<8x256xf32> to vector<8xf32>
    %7 = vector.shape_cast %6 : vector<8xf32> to vector<8x1xf32>
    %cst_3 = arith.constant dense<0.000000e+00> : vector<8xf32>
    %8 = vector.multi_reduction <add>, %0, %cst_3 [1] : vector<8x256xf32> to vector<8xf32>
    %9 = vector.shape_cast %8 : vector<8xf32> to vector<8x1xf32>
    %c0_4 = arith.constant 0 : index
    %c0_5 = arith.constant 0 : index
    %10 = vector.load %arg2[%c0_4, %c0_5] : memref<200x160xf32, #tpu.memory_space<vmem>>, vector<160x160xf32>
    %c160 = arith.constant 160 : index
    %c0_6 = arith.constant 0 : index
    %11 = vector.load %arg2[%c160, %c0_6] : memref<200x160xf32, #tpu.memory_space<vmem>>, vector<32x160xf32>
    %c192 = arith.constant 192 : index
    %c0_7 = arith.constant 0 : index
    %12 = vector.load %arg2[%c192, %c0_7] : memref<200x160xf32, #tpu.memory_space<vmem>>, vector<8x160xf32>
    %13 = vector.extract_strided_slice %12 {offsets = [0, 0], sizes = [1, 160], strides = [1, 1]} : vector<8x160xf32> to vector<1x160xf32>
    %14 = vector.extract_strided_slice %12 {offsets = [4, 0], sizes = [4, 160], strides = [1, 1]} : vector<8x160xf32> to vector<4x160xf32>
    %cst_8 = arith.constant 5.000000e-01 : f32
    %15 = vector.broadcast %cst_8 : f32 to vector<1x160xf32>
    %16 = arith.cmpf ogt, %13, %15 : vector<1x160xf32>
    %17 = arith.extui %16 : vector<1x160xi1> to vector<1x160xi32>
    %18 = arith.sitofp %17 : vector<1x160xi32> to vector<1x160xf32>
    %19 = vector.shape_cast %18 : vector<1x160xf32> to vector<1x160xf32>
    %20 = vector.broadcast %19 : vector<1x160xf32> to vector<32x160xf32>
    %21 = arith.mulf %20, %11 : vector<32x160xf32>
    %cst_9 = arith.constant 1.000000e+00 : f32
    %22 = vector.broadcast %cst_9 : f32 to vector<32x160xf32>
    %23 = arith.mulf %22, %21 : vector<32x160xf32>
    %cst_10 = arith.constant dense<0.000000e+00> : vector<32x160xf32>
    %24 = tpu.matmul %21, %10, %cst_10 {dimension_numbers = #tpu.dot_dimension_numbers<[1], [0], [0], [1], [0, 0, 1, 1], [], []>} : vector<32x160xf32>, vector<160x160xf32>, vector<32x160xf32> -> vector<32x160xf32>
    %25 = arith.addf %23, %24 : vector<32x160xf32>
    %cst_11 = arith.constant 0.000000e+00 : f32
    %26 = vector.broadcast %cst_11 : f32 to vector<32x160xf32>
    %27 = arith.maximumf %25, %26 : vector<32x160xf32>
    %28 = arith.mulf %20, %27 : vector<32x160xf32>
    %cst_12 = arith.constant 1.000000e+00 : f32
    %29 = vector.broadcast %cst_12 : f32 to vector<32x160xf32>
    %30 = arith.mulf %29, %28 : vector<32x160xf32>
    %cst_13 = arith.constant dense<0.000000e+00> : vector<32x160xf32>
    %31 = tpu.matmul %28, %10, %cst_13 {dimension_numbers = #tpu.dot_dimension_numbers<[1], [0], [0], [1], [0, 0, 1, 1], [], []>} : vector<32x160xf32>, vector<160x160xf32>, vector<32x160xf32> -> vector<32x160xf32>
    %32 = arith.addf %30, %31 : vector<32x160xf32>
    %cst_14 = arith.constant 0.000000e+00 : f32
    %33 = vector.broadcast %cst_14 : f32 to vector<32x160xf32>
    %34 = arith.maximumf %32, %33 : vector<32x160xf32>
    %35 = arith.mulf %20, %34 : vector<32x160xf32>
    %cst_15 = arith.constant 1.000000e+00 : f32
    %36 = vector.broadcast %cst_15 : f32 to vector<32x160xf32>
    %37 = arith.mulf %36, %35 : vector<32x160xf32>
    %cst_16 = arith.constant dense<0.000000e+00> : vector<32x160xf32>
    %38 = tpu.matmul %35, %10, %cst_16 {dimension_numbers = #tpu.dot_dimension_numbers<[1], [0], [0], [1], [0, 0, 1, 1], [], []>} : vector<32x160xf32>, vector<160x160xf32>, vector<32x160xf32> -> vector<32x160xf32>
    %39 = arith.addf %37, %38 : vector<32x160xf32>
    %cst_17 = arith.constant 0.000000e+00 : f32
    %40 = vector.broadcast %cst_17 : f32 to vector<32x160xf32>
    %41 = arith.maximumf %39, %40 : vector<32x160xf32>
    %42 = arith.mulf %20, %41 : vector<32x160xf32>
    %cst_18 = arith.constant dense<0.000000e+00> : vector<160xf32>
    %43 = vector.multi_reduction <add>, %42, %cst_18 [0] : vector<32x160xf32> to vector<160xf32>
    %44 = vector.shape_cast %43 : vector<160xf32> to vector<1x160xf32>
    %45 = vector.broadcast %44 : vector<1x160xf32> to vector<4x160xf32>
    %46 = arith.mulf %45, %14 : vector<4x160xf32>
    %cst_19 = arith.constant dense<0.000000e+00> : vector<4xf32>
    %47 = vector.multi_reduction <add>, %46, %cst_19 [1] : vector<4x160xf32> to vector<4xf32>
    %48 = vector.shape_cast %47 : vector<4xf32> to vector<4x1xf32>
    %cst_20 = arith.constant 0.000000e+00 : f32
    %49 = vector.broadcast %cst_20 : f32 to vector<1x1xf32>
    %50 = vector.extract_strided_slice %7 {offsets = [0, 0], sizes = [1, 1], strides = [1, 1]} : vector<8x1xf32> to vector<1x1xf32>
    %51 = vector.extract_strided_slice %7 {offsets = [1, 0], sizes = [1, 1], strides = [1, 1]} : vector<8x1xf32> to vector<1x1xf32>
    %52 = arith.addf %50, %51 : vector<1x1xf32>
    %53 = vector.extract_strided_slice %9 {offsets = [0, 0], sizes = [1, 1], strides = [1, 1]} : vector<8x1xf32> to vector<1x1xf32>
    %54 = vector.extract_strided_slice %9 {offsets = [1, 0], sizes = [1, 1], strides = [1, 1]} : vector<8x1xf32> to vector<1x1xf32>
    %55 = arith.addf %53, %54 : vector<1x1xf32>
    %cst_21 = arith.constant 4.720000e+02 : f32
    %56 = vector.broadcast %cst_21 : f32 to vector<1x1xf32>
    %57 = arith.subf %55, %56 : vector<1x1xf32>
    %cst_22 = arith.constant 5.000000e-02 : f32
    %58 = vector.broadcast %cst_22 : f32 to vector<1x1xf32>
    %59 = arith.mulf %57, %58 : vector<1x1xf32>
    %cst_23 = arith.constant 2.500000e-01 : f32
    %60 = vector.broadcast %cst_23 : f32 to vector<1x1xf32>
    %61 = arith.mulf %60, %59 : vector<1x1xf32>
    %62 = arith.mulf %61, %59 : vector<1x1xf32>
    %63 = arith.addf %52, %62 : vector<1x1xf32>
    %64 = vector.extract_strided_slice %48 {offsets = [0, 0], sizes = [1, 1], strides = [1, 1]} : vector<4x1xf32> to vector<1x1xf32>
    %cst_24 = arith.constant 3.125000e-02 : f32
    %65 = vector.broadcast %cst_24 : f32 to vector<1x1xf32>
    %66 = arith.mulf %64, %65 : vector<1x1xf32>
    %cst_25 = arith.constant 1.000000e-01 : f32
    %67 = vector.broadcast %cst_25 : f32 to vector<1x1xf32>
    %68 = arith.mulf %67, %66 : vector<1x1xf32>
    %69 = arith.mulf %68, %66 : vector<1x1xf32>
    %70 = arith.addf %63, %69 : vector<1x1xf32>
    %71 = vector.extract_strided_slice %7 {offsets = [2, 0], sizes = [1, 1], strides = [1, 1]} : vector<8x1xf32> to vector<1x1xf32>
    %72 = vector.extract_strided_slice %7 {offsets = [3, 0], sizes = [1, 1], strides = [1, 1]} : vector<8x1xf32> to vector<1x1xf32>
    %73 = arith.addf %71, %72 : vector<1x1xf32>
    %74 = vector.extract_strided_slice %9 {offsets = [2, 0], sizes = [1, 1], strides = [1, 1]} : vector<8x1xf32> to vector<1x1xf32>
    %75 = vector.extract_strided_slice %9 {offsets = [3, 0], sizes = [1, 1], strides = [1, 1]} : vector<8x1xf32> to vector<1x1xf32>
    %76 = arith.addf %74, %75 : vector<1x1xf32>
    %cst_26 = arith.constant 4.720000e+02 : f32
    %77 = vector.broadcast %cst_26 : f32 to vector<1x1xf32>
    %78 = arith.subf %76, %77 : vector<1x1xf32>
    %cst_27 = arith.constant 5.000000e-02 : f32
    %79 = vector.broadcast %cst_27 : f32 to vector<1x1xf32>
    %80 = arith.mulf %78, %79 : vector<1x1xf32>
    %cst_28 = arith.constant 2.500000e-01 : f32
    %81 = vector.broadcast %cst_28 : f32 to vector<1x1xf32>
    %82 = arith.mulf %81, %80 : vector<1x1xf32>
    %83 = arith.mulf %82, %80 : vector<1x1xf32>
    %84 = arith.addf %73, %83 : vector<1x1xf32>
    %85 = vector.extract_strided_slice %48 {offsets = [1, 0], sizes = [1, 1], strides = [1, 1]} : vector<4x1xf32> to vector<1x1xf32>
    %cst_29 = arith.constant 3.125000e-02 : f32
    %86 = vector.broadcast %cst_29 : f32 to vector<1x1xf32>
    %87 = arith.mulf %85, %86 : vector<1x1xf32>
    %cst_30 = arith.constant 1.000000e-01 : f32
    %88 = vector.broadcast %cst_30 : f32 to vector<1x1xf32>
    %89 = arith.mulf %88, %87 : vector<1x1xf32>
    %90 = arith.mulf %89, %87 : vector<1x1xf32>
    %91 = arith.addf %84, %90 : vector<1x1xf32>
    %92 = arith.minimumf %70, %91 : vector<1x1xf32>
    %93 = arith.addf %49, %92 : vector<1x1xf32>
    %94 = vector.extract_strided_slice %7 {offsets = [4, 0], sizes = [1, 1], strides = [1, 1]} : vector<8x1xf32> to vector<1x1xf32>
    %95 = vector.extract_strided_slice %7 {offsets = [5, 0], sizes = [1, 1], strides = [1, 1]} : vector<8x1xf32> to vector<1x1xf32>
    %96 = arith.addf %94, %95 : vector<1x1xf32>
    %97 = vector.extract_strided_slice %9 {offsets = [4, 0], sizes = [1, 1], strides = [1, 1]} : vector<8x1xf32> to vector<1x1xf32>
    %98 = vector.extract_strided_slice %9 {offsets = [5, 0], sizes = [1, 1], strides = [1, 1]} : vector<8x1xf32> to vector<1x1xf32>
    %99 = arith.addf %97, %98 : vector<1x1xf32>
    %cst_31 = arith.constant 4.720000e+02 : f32
    %100 = vector.broadcast %cst_31 : f32 to vector<1x1xf32>
    %101 = arith.subf %99, %100 : vector<1x1xf32>
    %cst_32 = arith.constant 5.000000e-02 : f32
    %102 = vector.broadcast %cst_32 : f32 to vector<1x1xf32>
    %103 = arith.mulf %101, %102 : vector<1x1xf32>
    %cst_33 = arith.constant 2.500000e-01 : f32
    %104 = vector.broadcast %cst_33 : f32 to vector<1x1xf32>
    %105 = arith.mulf %104, %103 : vector<1x1xf32>
    %106 = arith.mulf %105, %103 : vector<1x1xf32>
    %107 = arith.addf %96, %106 : vector<1x1xf32>
    %108 = vector.extract_strided_slice %48 {offsets = [2, 0], sizes = [1, 1], strides = [1, 1]} : vector<4x1xf32> to vector<1x1xf32>
    %cst_34 = arith.constant 3.125000e-02 : f32
    %109 = vector.broadcast %cst_34 : f32 to vector<1x1xf32>
    %110 = arith.mulf %108, %109 : vector<1x1xf32>
    %cst_35 = arith.constant 1.000000e-01 : f32
    %111 = vector.broadcast %cst_35 : f32 to vector<1x1xf32>
    %112 = arith.mulf %111, %110 : vector<1x1xf32>
    %113 = arith.mulf %112, %110 : vector<1x1xf32>
    %114 = arith.addf %107, %113 : vector<1x1xf32>
    %115 = vector.extract_strided_slice %7 {offsets = [6, 0], sizes = [1, 1], strides = [1, 1]} : vector<8x1xf32> to vector<1x1xf32>
    %116 = vector.extract_strided_slice %7 {offsets = [7, 0], sizes = [1, 1], strides = [1, 1]} : vector<8x1xf32> to vector<1x1xf32>
    %117 = arith.addf %115, %116 : vector<1x1xf32>
    %118 = vector.extract_strided_slice %9 {offsets = [6, 0], sizes = [1, 1], strides = [1, 1]} : vector<8x1xf32> to vector<1x1xf32>
    %119 = vector.extract_strided_slice %9 {offsets = [7, 0], sizes = [1, 1], strides = [1, 1]} : vector<8x1xf32> to vector<1x1xf32>
    %120 = arith.addf %118, %119 : vector<1x1xf32>
    %cst_36 = arith.constant 4.720000e+02 : f32
    %121 = vector.broadcast %cst_36 : f32 to vector<1x1xf32>
    %122 = arith.subf %120, %121 : vector<1x1xf32>
    %cst_37 = arith.constant 5.000000e-02 : f32
    %123 = vector.broadcast %cst_37 : f32 to vector<1x1xf32>
    %124 = arith.mulf %122, %123 : vector<1x1xf32>
    %cst_38 = arith.constant 2.500000e-01 : f32
    %125 = vector.broadcast %cst_38 : f32 to vector<1x1xf32>
    %126 = arith.mulf %125, %124 : vector<1x1xf32>
    %127 = arith.mulf %126, %124 : vector<1x1xf32>
    %128 = arith.addf %117, %127 : vector<1x1xf32>
    %129 = vector.extract_strided_slice %48 {offsets = [3, 0], sizes = [1, 1], strides = [1, 1]} : vector<4x1xf32> to vector<1x1xf32>
    %cst_39 = arith.constant 3.125000e-02 : f32
    %130 = vector.broadcast %cst_39 : f32 to vector<1x1xf32>
    %131 = arith.mulf %129, %130 : vector<1x1xf32>
    %cst_40 = arith.constant 1.000000e-01 : f32
    %132 = vector.broadcast %cst_40 : f32 to vector<1x1xf32>
    %133 = arith.mulf %132, %131 : vector<1x1xf32>
    %134 = arith.mulf %133, %131 : vector<1x1xf32>
    %135 = arith.addf %128, %134 : vector<1x1xf32>
    %136 = arith.minimumf %114, %135 : vector<1x1xf32>
    %137 = arith.addf %93, %136 : vector<1x1xf32>
    %cst_41 = arith.constant 5.000000e-01 : f32
    %138 = vector.broadcast %cst_41 : f32 to vector<1x1xf32>
    %139 = arith.mulf %137, %138 : vector<1x1xf32>
    %c0_42 = arith.constant 0 : index
    %c0_43 = arith.constant 0 : index
    %140 = vector.load %arg3[%c0_42, %c0_43] : memref<1x1xf32, #tpu.memory_space<vmem>>, vector<1x1xf32>
    tpu.vector_store %arg3[%c0_42, %c0_43], %139 {strides = array<i32>} : memref<1x1xf32, #tpu.memory_space<vmem>>, vector<1x1xf32>,
    return
  }
  func.func @transform_0(%arg0: i32) -> (i32, i32) {
    %c0_i32 = arith.constant 0 : i32
    %c0_i32_0 = arith.constant 0 : i32
    %c0_i32_1 = arith.constant 0 : i32
    return %c0_i32, %c0_i32_0 : i32, i32
  }
  func.func @transform_1(%arg0: i32) -> (i32, i32) {
    %c0_i32 = arith.constant 0 : i32
    %c0_i32_0 = arith.constant 0 : i32
    %c0_i32_1 = arith.constant 0 : i32
    return %c0_i32, %c0_i32_0 : i32, i32
  }
  func.func @transform_2(%arg0: i32) -> (i32, i32) {
    %c0_i32 = arith.constant 0 : i32
    %c0_i32_0 = arith.constant 0 : i32
    %c0_i32_1 = arith.constant 0 : i32
    return %c0_i32, %c0_i32_0 : i32, i32
  }
}

</mosaic_0001>

<bundles_post_ra>
// kernel: our_loss_forward.1
= control target key start
LH: loop header
LB: loop body
LE: loop exit
PB: predicated region body
PF: predicated region fallthrough
CT: control target
= control target key end

     0   :  { %v86_v17 = vlaneseq  ;;  %v753_v37 = vmov 0.0   ;;  %s1135_s0 = inlined_call_operand.vmem [shape: f32[16,256], index: 0, kind: input, shape index: {}]   ;;  %s1136_s1 = inlined_call_operand.vmem [shape: f32[200,160], index: 1, kind: input, shape index: {}]   ;;  %s1137_s2 = inlined_call_operand.hbm [shape: f32[1,1], index: 2, kind: output, shape index: {}]  }
   0x1   :  { %v31_v0 = vld [vmem:[%s1136_s1 + $0x8] sm:$0xff]  ;;  %v33_v1 = vld [vmem:[%s1136_s1 + $0x18] sm:$0xff]  ;;  %v30_v2 = vld [vmem:[%s1136_s1] sm:$0xff] }
   0x2   :  { %v779_v3 = vpack.c.bf16 %v33_v1, %v31_v0  ;;  %v32_v4 = vld [vmem:[%s1136_s1 + $0x10] sm:$0xff]  ;;  %v35_v5 = vld [vmem:[%s1136_s1 + $0x28] sm:$0xff]  ;;  %v37_v6 = vld [vmem:[%s1136_s1 + $0x38] sm:$0xff]  ;;  %v841_v24 = vshrl.u32 %v86_v17, 7 }
   0x3   :  { %v790_v7 = vpack.c.bf16 %v32_v4, %v30_v2  ;;  %v792_v8 = vpack.c.bf16 %v37_v6, %v35_v5  ;;  %v34_v9 = vld [vmem:[%s1136_s1 + $0x20] sm:$0xff]  ;;  %v36_v10 = vld [vmem:[%s1136_s1 + $0x30] sm:$0xff]  ;;  %v39_v11 = vld [vmem:[%s1136_s1 + $0x48] sm:$0xff] }
   0x4   :  { %584 = vmatprep.subr.bf16.mxu0 %v779_v3  ;;  %v41_v12 = vld [vmem:[%s1136_s1 + $0x58] sm:$0xff]  ;;  %624 = vmatprep.subr.bf16.mxu1 %v779_v3  ;;  %v809_v13 = vpack.c.bf16 %v36_v10, %v34_v9  ;;  %v38_v15 = vld [vmem:[%s1136_s1 + $0x40] sm:$0xff]  ;;  %v40_v16 = vld [vmem:[%s1136_s1 + $0x50] sm:$0xff]  ;;  %v88_v31 = vsub.s32 0, %v841_v24 }
   0x5   :  { %586 = vmatpush1.bf16.msra.mxu0 %v790_v7  ;;  %626 = vmatpush1.bf16.msra.mxu1 %v790_v7  ;;  %v813_v14 = vpack.c.bf16 %v41_v12, %v39_v11  ;;  %v43_v18 = vld [vmem:[%s1136_s1 + $0x68] sm:$0xff]  ;;  %v45_v19 = vld [vmem:[%s1136_s1 + $0x78] sm:$0xff]  ;;  %v829_v20 = vpack.c.bf16 %v40_v16, %v38_v15  ;;  %v42_v22 = vld [vmem:[%s1136_s1 + $0x60] sm:$0xff] }
   0x6   :  { %588 = vmatprep.subr.bf16.mxu0 %v792_v8  ;;  %628 = vmatprep.subr.bf16.mxu1 %v792_v8  ;;  %v833_v21 = vpack.c.bf16 %v45_v19, %v43_v18  ;;  %v44_v23 = vld [vmem:[%s1136_s1 + $0x70] sm:$0xff]  ;;  %v47_v25 = vld [vmem:[%s1136_s1 + $0x88] sm:$0xff]  ;;  %v49_v26 = vld [vmem:[%s1136_s1 + $0x98] sm:$0xff] }
   0x7   :  { %v851_v27 = vpack.c.bf16 %v44_v23, %v42_v22  ;;  %v855_v28 = vpack.c.bf16 %v49_v26, %v47_v25  ;;  %v46_v29 = vld [vmem:[%s1136_s1 + $0x80] sm:$0xff]  ;;  %v48_v30 = vld [vmem:[%s1136_s1 + $0x90] sm:$0xff]  ;;  %v51_v32 = vld [vmem:[%s1136_s1 + $0xa8] sm:$0xff] }
   0x8   :  { %v53_v33 = vld [vmem:[%s1136_s1 + $0xb8] sm:$0xff]  ;;  %v874_v34 = vld [vmem:[%s1136_s1 + $0x188] sm:$0xff]  ;;  %v878_v35 = vpack.c.bf16 %v48_v30, %v46_v29 }
   0x9   :  { %590 = vmatpush1.bf16.msra.mxu0 %v809_v13  ;;  %630 = vmatpush1.bf16.msra.mxu1 %v809_v13  ;;  %vm81_vm0 = vcmp.gt.f32.partialorder %v874_v34, 0.5  ;;  %v71_v36 = vld [vmem:[%s1136_s1 + $0x148] sm:$0xff] }
   0xa   :  { %592 = vmatprep.subr.bf16.mxu0 %v813_v14  ;;  %632 = vmatprep.subr.bf16.mxu1 %v813_v14  ;;  %v569_v38 = vsel %vm81_vm0, 1.0, %v753_v37 }
   0xd   :  { %594 = vmatpush1.bf16.msra.mxu0 %v829_v20  ;;  %634 = vmatpush1.bf16.msra.mxu1 %v829_v20 }
   0xe   :  { %596 = vmatprep.subr.bf16.mxu0 %v833_v21  ;;  %636 = vmatprep.subr.bf16.mxu1 %v833_v21 }
  0x11   :  { %598 = vmatpush1.bf16.msra.mxu0 %v851_v27  ;;  %638 = vmatpush1.bf16.msra.mxu1 %v851_v27 }
  0x12   :  { %7 = vsyncpa [#allocation3], 0  ;;  %600 = vmatprep.subr.bf16.mxu0 %v855_v28  ;;  %v885_v39 = vpack.c.bf16 %v53_v33, %v51_v32  ;;  %v50_v40 = vld [vmem:[%s1136_s1 + $0xa0] sm:$0xff]  ;;  %v52_v41 = vld [vmem:[%s1136_s1 + $0xb0] sm:$0xff]  ;;  %v895_v42 = vrot.slane %v569_v38, %v88_v31  ;;  %640 = vmatprep.subr.bf16.mxu1 %v855_v28  ;;  %vm102_vm1 = vcmask 261120   ;;  %vm502_vm3 = vcmask 1047556  }
  0x13   :  { %v55_v43 = vld [vmem:[%s1136_s1 + $0xc8] sm:$0xff]  ;;  %v57_v44 = vld [vmem:[%s1136_s1 + $0xd8] sm:$0xff]  ;;  %v908_v46 = vpack.c.bf16 %v52_v41, %v50_v40  ;;  %v54_v48 = vld [vmem:[%s1136_s1 + $0xc0] sm:$0xff]  ;;  %vm504_vm4 = vcmask 261124   ;;  %vm552_vm5 = vcmask 0  }
  0x14   :  { %v905_v45 = vmul.f32 %v895_v42, %v71_v36  ;;  %v912_v47 = vpack.c.bf16 %v57_v44, %v55_v43  ;;  %v56_v49 = vld [vmem:[%s1136_s1 + $0xd0] sm:$0xff]  ;;  %v59_v50 = vld [vmem:[%s1136_s1 + $0xe8] sm:$0xff]  ;;  %v61_v51 = vld [vmem:[%s1136_s1 + $0xf8] sm:$0xff] }
  0x15   :  { %602 = vmatpush1.bf16.msra.mxu0 %v878_v35  ;;  %642 = vmatpush1.bf16.msra.mxu1 %v878_v35  ;;  %v930_v52 = vpack.c.bf16 %v56_v49, %v54_v48  ;;  %v934_v53 = vpack.c.bf16 %v61_v51, %v59_v50  ;;  %v58_v54 = vld [vmem:[%s1136_s1 + $0xe0] sm:$0xff]  ;;  %v60_v55 = vld [vmem:[%s1136_s1 + $0xf0] sm:$0xff]  ;;  %v63_v56 = vld [vmem:[%s1136_s1 + $0x108] sm:$0xff] }
  0x16   :  { %604 = vmatprep.subr.bf16.mxu0 %v885_v39  ;;  %570 = vmatprep.mubr.msk.f32.mxu0 %vm102_vm1, %v905_v45  ;;  %v65_v57 = vld [vmem:[%s1136_s1 + $0x118] sm:$0xff]  ;;  %v952_v58 = vld [vmem:[%s1136_s1 + $0x180] sm:$0xff]  ;;  %v955_v59 = vpack.c.bf16 %v60_v55, %v58_v54  ;;  %v64_v62 = vld [vmem:[%s1136_s1 + $0x110] sm:$0xff] }
  0x17   :  { %644 = vmatprep.subr.bf16.mxu1 %v885_v39  ;;  %v959_v60 = vpack.c.bf16 %v65_v57, %v63_v56  ;;  %v62_v61 = vld [vmem:[%s1136_s1 + $0x100] sm:$0xff]  ;;  %vm80_vm2 = vcmp.gt.f32.partialorder %v952_v58, 0.5  ;;  %v67_v63 = vld [vmem:[%s1136_s1 + $0x128] sm:$0xff]  ;;  %v69_v0 = vld [vmem:[%s1136_s1 + $0x138] sm:$0xff] }
  0x18   :  { %v976_v1 = vpack.c.bf16 %v64_v62, %v62_v61  ;;  %v568_v2 = vsel %vm80_vm2, 1.0, %v753_v37  ;;  %v980_v4 = vpack.c.bf16 %v69_v0, %v67_v63  ;;  %v66_v5 = vld [vmem:[%s1136_s1 + $0x120] sm:$0xff]  ;;  %v68_v6 = vld [vmem:[%s1136_s1 + $0x130] sm:$0xff]  ;;  %v73_v12 = vld [vmem:[%s1136_s1 + $0x158] sm:$0xff] }
  0x19   :  { %606 = vmatpush1.bf16.msra.mxu0 %v908_v46  ;;  %646 = vmatpush1.bf16.msra.mxu1 %v908_v46  ;;  %v991_v9 = vrot.slane %v568_v2, %v88_v31  ;;  %v994_v10 = vpack.c.bf16 %v68_v6, %v66_v5  ;;  %v70_v11 = vld [vmem:[%s1136_s1 + $0x140] sm:$0xff]  ;;  %v97_v16 = vmul.f32 %v895_v42, %v73_v12  ;;  %v72_v17 = vld [vmem:[%s1136_s1 + $0x150] sm:$0xff]  ;;  %v75_v18 = vld [vmem:[%s1136_s1 + $0x168] sm:$0xff] }
  0x1a   :  { %608 = vmatprep.subr.bf16.mxu0 %v912_v47  ;;  %648 = vmatprep.subr.bf16.mxu1 %v912_v47  ;;  %v99_v22 = vmul.f32 %v895_v42, %v75_v18  ;;  %v74_v23 = vld [vmem:[%s1136_s1 + $0x160] sm:$0xff]  ;;  %v77_v24 = vld [vmem:[%s1136_s1 + $0x178] sm:$0xff]  ;;  %v76_v26 = vld [vmem:[%s1136_s1 + $0x170] sm:$0xff] }
  0x1b   :  { %v94_v15 = vmul.f32 %v991_v9, %v70_v11  ;;  %v96_v19 = vmul.f32 %v991_v9, %v72_v17  ;;  %v101_v25 = vmul.f32 %v895_v42, %v77_v24  ;;  %v100_v29 = vmul.f32 %v991_v9, %v76_v26 }
  0x1d   :  { %610 = vmatpush1.bf16.msra.mxu0 %v930_v52  ;;  %650 = vmatpush1.bf16.msra.mxu1 %v930_v52 }
  0x1e   :  { %612 = vmatprep.subr.bf16.mxu0 %v934_v53  ;;  %652 = vmatprep.subr.bf16.mxu1 %v934_v53 }
  0x21   :  { %614 = vmatpush1.bf16.msra.mxu0 %v955_v59  ;;  %654 = vmatpush1.bf16.msra.mxu1 %v955_v59 }
  0x22   :  { %616 = vmatprep.subr.bf16.mxu0 %v959_v60  ;;  %656 = vmatprep.subr.bf16.mxu1 %v959_v60 }
  0x25   :  { %618 = vmatpush1.bf16.msra.mxu0 %v976_v1  ;;  %658 = vmatpush1.bf16.msra.mxu1 %v976_v1 }
  0x26   :  { %620 = vmatprep.subr.bf16.mxu0 %v980_v4  ;;  %660 = vmatprep.subr.bf16.mxu1 %v980_v4 }
  0x29   :  { %622 = vmatpush1.bf16.msra.mxu0 %v994_v10  ;;  %662 = vmatpush1.bf16.msra.mxu1 %v994_v10 }
  0x2a   :  { %664 = vmatprep.subr.bf16.mxu0 %v779_v3  ;;  %703 = vmatprep.subr.bf16.mxu1 %v779_v3  ;;  %v98_v3 = vmul.f32 %v991_v9, %v74_v23 }
  0x2c   :  { %180 = vmatmul.mubr.f32.vlgmr.msra.gmra.mrb[0].mxu0 %v94_v15 }
  0x2d   :  { %571 = vmatprep.mubr.msk.f32.mxu0 %vm102_vm1, %v97_v16  ;;  %666 = vmatpush1.bf16.msra.mxu0 %v790_v7 }
  0x2e   :  { %668 = vmatprep.subr.bf16.mxu0 %v792_v8 }
  0x30   :  { %186 = vmatmul.mubr.f32.gmra.mrb[2].mxu0 %v96_v19 }
  0x31   :  { %572 = vmatprep.mubr.msk.f32.mxu0 %vm102_vm1, %v99_v22  ;;  %670 = vmatpush1.bf16.msra.mxu0 %v809_v13 }
  0x32   :  { %672 = vmatprep.subr.bf16.mxu0 %v813_v14 }
  0x34   :  { %192 = vmatmul.mubr.f32.gmra.mrb[4].mxu0 %v98_v3 }
  0x35   :  { %573 = vmatprep.mubr.msk.f32.mxu0 %vm102_vm1, %v101_v25  ;;  %674 = vmatpush1.bf16.msra.mxu0 %v829_v20 }
  0x36   :  { %676 = vmatprep.subr.bf16.mxu0 %v833_v21 }
  0x38   :  { %198 = vmatmul.mubr.f32.gmra.mrb[6].mxu0 %v100_v29 }
  0x39   :  { %678 = vmatpush1.bf16.msra.mxu0 %v851_v27 }
  0x3a   :  { %680 = vmatprep.subr.bf16.mxu0 %v855_v28 }
  0x3d   :  { %682 = vmatpush1.bf16.msra.mxu0 %v878_v35 }
  0x3e   :  { %684 = vmatprep.subr.bf16.mxu0 %v885_v39 }
  0x41   :  { %686 = vmatpush1.bf16.msra.mxu0 %v908_v46 }
  0x42   :  { %688 = vmatprep.subr.bf16.mxu0 %v912_v47 }
  0x45   :  { %690 = vmatpush1.bf16.msra.mxu0 %v930_v52 }
  0x46   :  { %692 = vmatprep.subr.bf16.mxu0 %v934_v53 }
  0x49   :  { %694 = vmatpush1.bf16.msra.mxu0 %v955_v59 }
  0x4a   :  { %696 = vmatprep.subr.bf16.mxu0 %v959_v60 }
  0x4d   :  { %698 = vmatpush1.bf16.msra.mxu0 %v976_v1 }
  0x4e   :  { %700 = vmatprep.subr.bf16.mxu0 %v980_v4 }
  0x51   :  { %702 = vmatpush1.bf16.msra.mxu0 %v994_v10 }
  0xff   :  { %v181_v30 = vpop.f32.mrb[0].mxu0 }
 0x100   :  { %v204_v31 = vadd.f32 %v181_v30, %v94_v15  ;;  %v183_v32 = vpop.f32.mrb[1].mxu0 }
 0x101   :  { %v205_v33 = vadd.f32 %v183_v32, %v905_v45 }
 0x102   :  { %v212_v36 = vmax.f32 %v204_v31, 0.0 }
 0x103   :  { %v213_v37 = vmax.f32 %v205_v33, 0.0  ;;  %v187_v38 = vpop.f32.mrb[2].mxu0 }
 0x104   :  { %v206_v40 = vadd.f32 %v187_v38, %v96_v19  ;;  %v189_v41 = vpop.f32.mrb[3].mxu0  ;;  %v220_v48 = vmul.f32 %v212_v36, %v991_v9  ;;  %v12_v36 = vld [vmem:[%s1135_s0] sm:$0xff] }
 0x105   :  { %v207_v43 = vadd.f32 %v189_v41, %v97_v16  ;;  %v221_v44 = vmul.f32 %v213_v37, %v895_v42  ;;  %v13_v37 = vld [vmem:[%s1135_s0 + $0x8] sm:$0xff] }
 0x106   :  { %v214_v49 = vmax.f32 %v206_v40, 0.0  ;;  %v17_v38 = vadd.f32 1e-12, %v13_v37  ;;  %v16_v40 = vadd.f32 1e-12, %v12_v36  ;;  %v27_v41 = vadd.f32 %v13_v37, %v12_v36 }
 0x107   :  { %v215_v50 = vmax.f32 %v207_v43, 0.0  ;;  %v193_v51 = vpop.f32.mrb[4].mxu0  ;;  %574 = vmatprep.mubr.msk.f32.mxu1 %vm102_vm1, %v221_v44 }
 0x108   :  { %v208_v54 = vadd.f32 %v193_v51, %v98_v3  ;;  %v195_v55 = vpop.f32.mrb[5].mxu0  ;;  %305 = vmatmul.mubr.f32.vlgmr.msra.gmra.mrb[0].mxu1 %v220_v48  ;;  %v222_v57 = vmul.f32 %v214_v49, %v991_v9  ;;  %725 = vlog2.f32 %v17_v38  ;;  %28 = vadd.xlane.f32.xlu0 %v27_v41  ;;  %v14_v49 = vld [vmem:[%s1135_s0 + $0x10] sm:$0xff] }
 0x109   :  { %v223_v45 = vmul.f32 %v215_v50, %v895_v42  ;;  %v209_v56 = vadd.f32 %v195_v55, %v99_v22  ;;  %713 = vmatpush1.bf16.msra.mxu1 %v790_v7  ;;  %727 = vlog2.f32 %v16_v40 }
 0x10a   :  { %v216_v61 = vmax.f32 %v208_v54, 0.0  ;;  %704 = vmatprep.subr.bf16.mxu1 %v792_v8 }
 0x10b   :  { %v217_v62 = vmax.f32 %v209_v56, 0.0  ;;  %v199_v63 = vpop.f32.mrb[6].mxu0  ;;  %575 = vmatprep.mubr.msk.f32.mxu1 %vm102_vm1, %v223_v45 }
 0x10c   :  { %v210_v0 = vadd.f32 %v199_v63, %v100_v29  ;;  %v201_v2 = vpop.f32.mrb[7].mxu0  ;;  %311 = vmatmul.mubr.f32.gmra.mrb[2].mxu1 %v222_v57  ;;  %v224_v11 = vmul.f32 %v216_v61, %v991_v9 }
 0x10d   :  { %v225_v5 = vmul.f32 %v217_v62, %v895_v42  ;;  %v211_v6 = vadd.f32 %v201_v2, %v101_v25  ;;  %714 = vmatpush1.bf16.msra.mxu1 %v809_v13 }
 0x10e   :  { %v218_v7 = vmax.f32 %v210_v0, 0.0  ;;  %705 = vmatprep.subr.bf16.mxu1 %v813_v14 }
 0x10f   :  { %v219_v12 = vmax.f32 %v211_v6, 0.0  ;;  %576 = vmatprep.mubr.msk.f32.mxu1 %vm102_vm1, %v225_v5 }
 0x110   :  { %317 = vmatmul.mubr.f32.gmra.mrb[4].mxu1 %v224_v11  ;;  %v226_v15 = vmul.f32 %v218_v7, %v991_v9 }
 0x111   :  { %v227_v8 = vmul.f32 %v219_v12, %v895_v42  ;;  %715 = vmatpush1.bf16.msra.mxu1 %v829_v20 }
 0x112   :  { %706 = vmatprep.subr.bf16.mxu1 %v833_v21  ;;  %v726_v43 = vpop.eup %725 }
 0x113   :  { %577 = vmatprep.mubr.msk.f32.mxu1 %vm102_vm1, %v227_v8  ;;  %v21_v50 = vmul.f32 0.6931472, %v726_v43 }
 0x114   :  { %323 = vmatmul.mubr.f32.gmra.mrb[6].mxu1 %v226_v15 }
 0x115   :  { %716 = vmatpush1.bf16.msra.mxu1 %v851_v27 }
 0x116   :  { %707 = vmatprep.subr.bf16.mxu1 %v855_v28 }
 0x119   :  { %717 = vmatpush1.bf16.msra.mxu1 %v878_v35 }
 0x11a   :  { %708 = vmatprep.subr.bf16.mxu1 %v885_v39 }
 0x11d   :  { %718 = vmatpush1.bf16.msra.mxu1 %v908_v46 }
 0x11e   :  { %709 = vmatprep.subr.bf16.mxu1 %v912_v47 }
 0x121   :  { %719 = vmatpush1.bf16.msra.mxu1 %v930_v52 }
 0x122   :  { %710 = vmatprep.subr.bf16.mxu1 %v934_v53 }
 0x125   :  { %720 = vmatpush1.bf16.msra.mxu1 %v955_v59 }
 0x126   :  { %711 = vmatprep.subr.bf16.mxu1 %v959_v60 }
 0x129   :  { %721 = vmatpush1.bf16.msra.mxu1 %v976_v1 }
 0x12a   :  { %712 = vmatprep.subr.bf16.mxu1 %v980_v4 }
 0x12d   :  { %722 = vmatpush1.bf16.msra.mxu1 %v994_v10 }
 0x1db   :  { %v306_v13 = vpop.f32.mrb[0].mxu1 }
 0x1dc   :  { %v329_v14 = vadd.f32 %v306_v13, %v220_v48  ;;  %v308_v20 = vpop.f32.mrb[1].mxu1  ;;  %v728_v48 = vpop.eup %727 }
 0x1dd   :  { %v330_v21 = vadd.f32 %v308_v20, %v221_v44  ;;  %v15_v44 = vld [vmem:[%s1135_s0 + $0x18] sm:$0xff]  ;;  %v19_v51 = vmul.f32 0.6931472, %v728_v48  ;;  %s754_s0 = smov [#allocation2]  }
 0x1de   :  { %v337_v27 = vmax.f32 %v329_v14, 0.0  ;;  %v23_v54 = vmul.f32 %v21_v50, %v15_v44  ;;  %s560_s4 = sshll.u32 %s754_s0, 4  ;;  %s561_s4 = int_to_ptr.vmem [resolvable:$true] %s560_s4 }
 0x1df   :  { %v338_v28 = vmax.f32 %v330_v21, 0.0  ;;  %v312_v35 = vpop.f32.mrb[2].mxu1  ;;  %v22_v55 = vmul.f32 %v19_v51, %v14_v49  ;;  %s729_s5 = scalar_lea.vmem %s561_s4, 16  ;;  %s733_s6 = scalar_lea.vmem %s561_s4, 32 }
 0x1e0   :  { %v331_v39 = vadd.f32 %v312_v35, %v222_v57  ;;  %v314_v46 = vpop.f32.mrb[3].mxu1  ;;  %v345_v53 = vmul.f32 %v337_v27, %v991_v9  ;;  %p730_p0 = scmp.ne.s32.totalorder %s561_s4, %s729_s5  ;;  %p734_p1 = scmp.lt.s32.totalorder %s561_s4, %s561_s4 }
 0x1e1   :  { %v346_v47 = vmul.f32 %v338_v28, %v895_v42  ;;  %v332_v52 = vadd.f32 %v314_v46, %v223_v45  ;;  %v24_v45 = vadd.f32 %v23_v54, %v22_v55  ;;  %v29_v54 = vpop.xlane.xlu0 %28  ;;  %p735_p2 = scmp.lt.s32.totalorder %s733_s6, %s729_s5 }
 0x1e2   :  { %v339_v59 = vmax.f32 %v331_v39, 0.0  ;;  %v514_v55 = vrot.slane %v29_v54, 1 }
 0x1e3   :  { %v340_v60 = vmax.f32 %v332_v52, 0.0  ;;  %v318_v1 = vpop.f32.mrb[4].mxu1  ;;  %578 = vmatprep.mubr.msk.f32.mxu0 %vm102_vm1, %v346_v47  ;;  %25 = vadd.xlane.f32.xlu1 %v24_v45  ;;  %p736_p3 = por %p735_p2, %p734_p1 }
 0x1e4   :  { %v333_v4 = vadd.f32 %v318_v1, %v224_v11  ;;  %v320_v10 = vpop.f32.mrb[5].mxu1  ;;  %430 = vmatmul.mubr.f32.vlgmr.msra.gmra.mrb[8].mxu0 %v345_v53  ;;  %v347_v18 = vmul.f32 %v339_v59, %v991_v9  ;;  %v516_v45 = vadd.f32 %v514_v55, %v29_v54 }
 0x1e5   :  { %v348_v16 = vmul.f32 %v340_v60, %v895_v42  ;;  %v334_v17 = vadd.f32 %v320_v10, %v225_v5  ;;  %p737_p4 = pnand %p736_p3, %p730_p0 }
 0x1e6   :  { %v341_v19 = vmax.f32 %v333_v4, 0.0 }
 0x1e7   :  { %v342_v22 = vmax.f32 %v334_v17, 0.0  ;;  %v324_v23 = vpop.f32.mrb[6].mxu1  ;;  %579 = vmatprep.mubr.msk.f32.mxu0 %vm102_vm1, %v348_v16 }
 0x1e8   :  { %v335_v24 = vadd.f32 %v324_v23, %v226_v15  ;;  %v326_v3 = vpop.f32.mrb[7].mxu1  ;;  %436 = vmatmul.mubr.f32.gmra.mrb[10].mxu0 %v347_v18  ;;  %v349_v29 = vmul.f32 %v341_v19, %v991_v9 }
 0x1e9   :  { %v350_v25 = vmul.f32 %v342_v22, %v895_v42  ;;  %v336_v26 = vadd.f32 %v326_v3, %v227_v8 }
 0x1ea   :  { %v343_v30 = vmax.f32 %v335_v24, 0.0 }
 0x1eb   :  { %v344_v31 = vmax.f32 %v336_v26, 0.0  ;;  %580 = vmatprep.mubr.msk.f32.mxu1 %vm102_vm1, %v350_v25 }
 0x1ec   :  { %442 = vmatmul.mubr.f32.vlgmr.msra.gmra.mrb[8].mxu1 %v349_v29  ;;  %v351_v33 = vmul.f32 %v343_v30, %v991_v9 }
 0x1ed   :  { %v352_v32 = vmul.f32 %v344_v31, %v895_v42 }
 0x1ef   :  { %581 = vmatprep.mubr.msk.f32.mxu1 %vm102_vm1, %v352_v32 }
 0x1f0   :  { %448 = vmatmul.mubr.f32.gmra.mrb[10].mxu1 %v351_v33 }
 0x2b7   :  { %v431_v56 = vpop.f32.mrb[8].mxu0 }
 0x2b8   :  { %v454_v57 = vadd.f32 %v431_v56, %v345_v53  ;;  %v433_v61 = vpop.f32.mrb[9].mxu0  ;;  %v582_v56 = vadd.f32 -472.0, %v516_v45 }
 0x2b9   :  { %v455_v62 = vadd.f32 %v433_v61, %v346_v47  ;;  %v26_v61 = vpop.xlane.xlu1 %25 }
 0x2ba   :  { %v462_v2 = vmax.f32 %v454_v57, 0.0  ;;  %v518_v57 = vmul.f32 0.05, %v582_v56 }
 0x2bb   :  { %v463_v63 = vmax.f32 %v455_v62, 0.0  ;;  %v437_v0 = vpop.f32.mrb[10].mxu0 }
 0x2bc   :  { %v456_v5 = vadd.f32 %v437_v0, %v347_v18  ;;  %v439_v6 = vpop.f32.mrb[11].mxu0  ;;  %v470_v13 = vmul.f32 %v462_v2, %v991_v9  ;;  %v519_v62 = vmul.f32 0.25, %v518_v57 }
 0x2bd   :  { %v457_v11 = vadd.f32 %v439_v6, %v348_v16  ;;  %v471_v12 = vmul.f32 %v463_v63, %v895_v42  ;;  %v510_v63 = vrot.slane %v26_v61, 1 }
 0x2be   :  { %v464_v7 = vmax.f32 %v456_v5, 0.0  ;;  %v520_v5 = vmul.f32 %v519_v62, %v518_v57 }
 0x2bf   :  { %v465_v8 = vmax.f32 %v457_v11, 0.0  ;;  %v443_v15 = vpop.f32.mrb[8].mxu1  ;;  %v487_v46 = vsel %vm102_vm1, %v471_v12, 0.0 }
 0x2c0   :  { %v472_v14 = vmul.f32 %v464_v7, %v991_v9  ;;  %v458_v20 = vadd.f32 %v443_v15, %v349_v29  ;;  %v445_v21 = vpop.f32.mrb[9].mxu1 }
 0x2c1   :  { %v473_v27 = vmul.f32 %v465_v8, %v895_v42  ;;  %v459_v28 = vadd.f32 %v445_v21, %v350_v25 }
 0x2c2   :  { %v478_v35 = vadd.f32 %v472_v14, %v470_v13  ;;  %v466_v39 = vmax.f32 %v458_v20, 0.0 }
 0x2c3   :  { %v488_v47 = vsel %vm102_vm1, %v473_v27, 0.0  ;;  %v467_v52 = vmax.f32 %v459_v28, 0.0  ;;  %v449_v53 = vpop.f32.mrb[10].mxu1 }
 0x2c4   :  { %v489_v59 = vadd.f32 %v488_v47, %v487_v46  ;;  %v474_v60 = vmul.f32 %v466_v39, %v991_v9  ;;  %v460_v1 = vadd.f32 %v449_v53, %v351_v33  ;;  %v451_v4 = vpop.f32.mrb[11].mxu1 }
 0x2c5   :  { %v475_v10 = vmul.f32 %v467_v52, %v895_v42  ;;  %v461_v16 = vadd.f32 %v451_v4, %v352_v32 }
 0x2c6   :  { %v479_v17 = vadd.f32 %v478_v35, %v474_v60  ;;  %v468_v18 = vmax.f32 %v460_v1, 0.0 }
 0x2c7   :  { %v490_v19 = vsel %vm102_vm1, %v475_v10, 0.0  ;;  %v469_v22 = vmax.f32 %v461_v16, 0.0 }
 0x2c8   :  { %v491_v23 = vadd.f32 %v490_v19, %v489_v59  ;;  %v476_v24 = vmul.f32 %v468_v18, %v991_v9 }
 0x2c9   :  { %v477_v3 = vmul.f32 %v469_v22, %v895_v42 }
 0x2ca   :  { %v480_v25 = vadd.f32 %v479_v17, %v476_v24 }
 0x2cb   :  { %v492_v26 = vsel %vm102_vm1, %v477_v3, 0.0 }
 0x2cc   :  { %v481_v29 = vrot.slane %v480_v25, 4  ;;  %v493_v30 = vadd.f32 %v492_v26, %v491_v23 }
 0x2ce   :  { %v482_v31 = vadd.f32 %v481_v29, %v480_v25  ;;  %v494_v33 = vrot.slane %v493_v30, 4 }
 0x2d0   :  { %v483_v36 = vrot.slane %v482_v31, 2  ;;  %v495_v37 = vadd.f32 %v494_v33, %v493_v30 }
 0x2d2   :  { %v496_v32 = vrot.slane %v495_v37, 2  ;;  %v484_v38 = vadd.f32 %v483_v36, %v482_v31 }
 0x2d4   :  { %v485_v40 = vrot.slane %v484_v38, 1  ;;  %v497_v41 = vadd.f32 %v496_v32, %v495_v37 }
 0x2d6   :  { %v486_v43 = vadd.f32 %v485_v40, %v484_v38  ;;  %v498_v44 = vrot.slane %v497_v41, 1 }
 0x2d8   :  { %v499_v48 = vadd.f32 %v498_v44, %v497_v41  ;;  %v500_v9 = vmul.f32 %v486_v43, %v952_v58  ;;  %v512_v58 = vadd.f32 %v510_v63, %v26_v61 }
 0x2da   :  { %v501_v42 = vmul.f32 %v499_v48, %v874_v34  ;;  %v503_v49 = vsel %vm502_vm3, %v500_v9, 0.0  ;;  %v521_v7 = vadd.f32 %v520_v5, %v512_v58 }
 0x2dc   :  { %v505_v50 = vsel %vm504_vm4, %v501_v42, 0.0 }
 0x2dd   :  { %v506_v51 = vadd.f32 %v505_v50, %v503_v49 }
 0x2df   :  { %507 = vadd.xlane.f32.xlu0 %v506_v51 }
 0x36c   :  { %v508_v0 = vpop.xlane.xlu0 %507 }
 0x36d   :  { %v522_v2 = vmul.f32 0.03125, %v508_v0 }
 0x36f   :  { %v523_v6 = vmul.f32 0.1, %v522_v2 }
 0x371   :  { %v524_v11 = vmul.f32 %v523_v6, %v522_v2 }
 0x373   :  { %v529_v34 = vrot.slane %v524_v11, 3  ;;  %v537_v12 = vrot.slane %v524_v11, 2  ;;  %v540_v8 = vrot.slane %v524_v11, 1  ;;  %v526_v15 = vrot.slane %v524_v11, 4 }
 0x375   :  { %v531_v13 = vadd.f32 %v529_v34, %v521_v7  ;;  %v542_v14 = vadd.f32 %v540_v8, %v521_v7  ;;  %v539_v21 = vadd.f32 %v537_v12, %v521_v7  ;;  %v528_v28 = vadd.f32 %v526_v15, %v521_v7 }
 0x377   :  { %v533_v20 = vrot.slane %v531_v13, 2  ;;  %v544_v27 = vrot.slane %v542_v14, 2 }
 0x379   :  { %v546_v35 = vmin.f32 %v539_v21, %v544_v27  ;;  %v535_v39 = vmin.f32 %v528_v28, %v533_v20 }
 0x37b   :  { %v548_v46 = vrot.slane %v546_v35, 4 }
 0x37d   :  { %v550_v47 = vadd.f32 %v548_v46, %v535_v39 }
 0x37f   :  { %v551_v52 = vmul.f32 0.5, %v550_v47 }
 0x381   :  { %553 = vst.msk [vmem:[#allocation2] sm:$0x1] %vm552_vm5, %v551_v52 }
 0x382   :  { %740 = shalt.err (!%p737_p4)
}
 0x383   :  { %s741_s9 = scalar_lea.hbm %s1137_s2, 16 }
 0x384   :  { %p742_p5 = scmp.ne.s32.totalorder %s1137_s2, %s741_s9  ;;  %p745_p6 = scmp.lt.u32.totalorder %s741_s9, %s1137_s2 }
 0x386   :  { %p747_p7 = pnand %p745_p6, %p742_p5 }
 0x388   :  { %750 = shalt.err (!%p747_p7)
}
 0x389   :  { %563 = dma.vmem_to_hbm [thread:$0]  %s561_s4, 16, %s1137_s2, [#allocation3]  }
 0x38a   :  { %751 = dma.done.wait [#allocation3], 16  }
 0x38b   :  { %752 = vsyncadd [#allocation3], 4294967280 }
 0x38c   :  { %567 = vsyncpa [#allocation3], 1 }

</bundles_post_ra>
